<compile_context>
chip_gen: v7x
topology: tpu7x:2x2x1
jax: 0.10.0
libtpu: 0.0.40
codegen_flags: <defaults>
</compile_context>

<pallas_src>
import functools
import math

import jax
import jax.numpy as jnp
from jax.experimental import pallas as pl
from jax.experimental.pallas import tpu as pltpu


# -----------------------------------------------------------------------------
# Per-generation VMEM budgeting.
# `budget` bounds the planned per-block VMEM footprint:
#   2 double-buffered input blocks + 2 double-buffered output blocks at the
#   array itemsize, plus ~3 live f32 working copies inside the kernel
#   (x_f32, shifted, exp)  =>  per-element cost ~ 4*itemsize + 12 bytes.
# -----------------------------------------------------------------------------
@functools.lru_cache(maxsize=None)
def _chip_budget():
    kind = ""
    try:
        kind = jax.devices()[0].device_kind.lower()
    except Exception:
        pass
    if "v5" in kind and ("lite" in kind or "v5e" in kind):
        # v5e: 16 MiB scoped-VMEM default -> keep blocks small.
        return 7 * 1024 * 1024, 32 * 1024 * 1024
    if "v6" in kind:
        # v6e: 32 MiB scoped / 128 MiB physical -> bigger blocks, fewer grid steps.
        return 28 * 1024 * 1024, 64 * 1024 * 1024
    # v7x (64 MiB physical, 2 TCs) and unknown chips: conservative.
    return 14 * 1024 * 1024, 32 * 1024 * 1024


def _per_elem_bytes(dtype):
    return 4 * jnp.dtype(dtype).itemsize + 12


def _row_tile(rows, row_cost_bytes, budget):
    """Rows per block: full extent if it fits, else a multiple of 8 (sublane)."""
    tr = max(1, budget // max(1, row_cost_bytes))
    if tr >= rows:
        return rows
    return max(8, (tr // 8) * 8)


# -----------------------------------------------------------------------------
# Kernels.
# -----------------------------------------------------------------------------
def _lane_kernel(x_ref, o_ref):
    """Numerically stable log-softmax over the last (lane) axis of the tile."""
    x = x_ref[...].astype(jnp.float32)
    m = jnp.max(x, axis=-1, keepdims=True)
    shifted = x - m
    lse = jnp.log(jnp.sum(jnp.exp(shifted), axis=-1, keepdims=True))
    o_ref[...] = (shifted - lse).astype(o_ref.dtype)


def _sublane_kernel(x_ref, o_ref):
    """Numerically stable log-softmax over the second-to-last (sublane) axis."""
    x = x_ref[...].astype(jnp.float32)
    m = jnp.max(x, axis=-2, keepdims=True)
    shifted = x - m
    lse = jnp.log(jnp.sum(jnp.exp(shifted), axis=-2, keepdims=True))
    o_ref[...] = (shifted - lse).astype(o_ref.dtype)


def _make_packed_kernel(num_groups, group_stride):
    """log-softmax over groups of `num_groups` (power of 2) elements strided by
    `group_stride` inside a lane-dense row of length num_groups*group_stride.

    Row layout is the flattened (red, post) slab: lane l belongs to reduction
    group (l % group_stride).  Segmented max / sum are computed with a log2
    tree of circular lane rotations (XLU) so every lane holds its group's
    statistic; no cross-lane masking, fully dense stores.
    """
    shifts = [group_stride * (1 << i) for i in range(num_groups.bit_length() - 1)]

    def kernel(x_ref, o_ref):
        x = x_ref[...].astype(jnp.float32)
        m = x
        for s in shifts:
            m = jnp.maximum(m, pltpu.roll(m, shift=s, axis=-1))
        shifted = x - m
        e = jnp.exp(shifted)
        for s in shifts:
            e = e + pltpu.roll(e, shift=s, axis=-1)
        o_ref[...] = (shifted - jnp.log(e)).astype(o_ref.dtype)

    return kernel


# -----------------------------------------------------------------------------
# Tiled drivers (one HBM pass in, one out; row axis grid-tiled so BlockSpec
# double-buffering overlaps DMA with compute; marked "parallel" so multi-TC
# chips can shard the grid).
# -----------------------------------------------------------------------------
def _log_softmax_lane(x2d):
    """log-softmax over the last axis of a 2-D [R, C] slab, row-tiled."""
    R, C = x2d.shape
    budget, vmem_limit = _chip_budget()
    TR = _row_tile(R, C * _per_elem_bytes(x2d.dtype), budget)
    # NOTE: for C < 128 lanes are partially used (masked stores); for very wide
    # C the block is pinned at 8 rows -- a column-tiled online-LSE variant
    # would improve both, but is not needed for this module's shapes.
    return pl.pallas_call(
        _lane_kernel,
        out_shape=jax.ShapeDtypeStruct((R, C), x2d.dtype),
        grid=(pl.cdiv(R, TR),),
        in_specs=[pl.BlockSpec((TR, C), lambda i: (i, 0))],
        out_specs=pl.BlockSpec((TR, C), lambda i: (i, 0)),
        compiler_params=pltpu.CompilerParams(
            dimension_semantics=("parallel",),
            vmem_limit_bytes=vmem_limit),
    )(x2d)


def _log_softmax_packed(x3d):
    """Lane-dense path for small `post`: view (pre, red, post) as (pre, red*post)."""
    P, K, Q = x3d.shape
    L = K * Q
    budget, vmem_limit = _chip_budget()
    x2d = x3d.reshape(P, L)          # free: the (red, post) slab is contiguous in HBM
    TB = _row_tile(P, L * _per_elem_bytes(x3d.dtype), budget)
    out = pl.pallas_call(
        _make_packed_kernel(K, Q),
        out_shape=jax.ShapeDtypeStruct((P, L), x3d.dtype),
        grid=(pl.cdiv(P, TB),),
        in_specs=[pl.BlockSpec((TB, L), lambda i: (i, 0))],
        out_specs=pl.BlockSpec((TB, L), lambda i: (i, 0)),
        compiler_params=pltpu.CompilerParams(
            dimension_semantics=("parallel",),
            vmem_limit_bytes=vmem_limit),
    )(x2d)
    return out.reshape(P, K, Q)


def _log_softmax_sublane(x3d):
    """Sublane-reduction path: reduce the middle axis of [pre, red, post]."""
    P, K, Q = x3d.shape
    budget, vmem_limit = _chip_budget()
    per_elem = _per_elem_bytes(x3d.dtype)
    slab_cost = K * Q * per_elem

    if slab_cost <= budget or Q <= 128:
        # Full (red, post) slab per block; tile only the leading "pre" axis.
        TB = max(1, min(P, budget // max(1, slab_cost)))
        return pl.pallas_call(
            _sublane_kernel,
            out_shape=jax.ShapeDtypeStruct((P, K, Q), x3d.dtype),
            grid=(pl.cdiv(P, TB),),
            in_specs=[pl.BlockSpec((TB, K, Q), lambda i: (i, 0, 0))],
            out_specs=pl.BlockSpec((TB, K, Q), lambda i: (i, 0, 0)),
            compiler_params=pltpu.CompilerParams(
                dimension_semantics=("parallel",),
                vmem_limit_bytes=vmem_limit),
        )(x3d)

    # Large post: also tile the lane (post) axis in multiples of 128.  The
    # reduction is over `red` (sublanes), so lane tiling needs no online-LSE.
    TQ = max(128, (budget // max(1, K * per_elem * 128)) * 128)
    TQ = min(TQ, ((Q + 127) // 128) * 128)
    TB = max(1, min(P, budget // max(1, K * TQ * per_elem)))
    return pl.pallas_call(
        _sublane_kernel,
        out_shape=jax.ShapeDtypeStruct((P, K, Q), x3d.dtype),
        grid=(pl.cdiv(P, TB), pl.cdiv(Q, TQ)),
        in_specs=[pl.BlockSpec((TB, K, TQ), lambda i, j: (i, 0, j))],
        out_specs=pl.BlockSpec((TB, K, TQ), lambda i, j: (i, 0, j)),
        compiler_params=pltpu.CompilerParams(
            dimension_semantics=("parallel", "parallel"),
            vmem_limit_bytes=vmem_limit),
    )(x3d)


# -----------------------------------------------------------------------------
# Public entry points.
# -----------------------------------------------------------------------------
def _canonicalize(x, dim):
    dim = dim % x.ndim
    shape = x.shape
    red = shape[dim]
    pre = math.prod(shape[:dim]) if dim > 0 else 1
    post = math.prod(shape[dim + 1:]) if dim < x.ndim - 1 else 1
    return pre, red, post


def pallas_log_softmax(x, dim):
    """log_softmax(x, dim) via Pallas kernels; no HBM transposes, single pass."""
    shape = x.shape
    pre, red, post = _canonicalize(x, dim)
    if post == 1:
        out = _log_softmax_lane(x.reshape(pre, red))
    elif (post < 128 and (red & (red - 1)) == 0
          and (red * post) % 128 == 0 and red * post <= 1024):
        # Narrow trailing axis: lane-dense packed (roll-tree) kernel.
        x3d = x.reshape(pre, red, post)
        try:
            out = _log_softmax_packed(x3d)
        except Exception:
            # Safety net: fall back to the always-correct sublane kernel if the
            # packed variant fails to lower on some toolchain.
            out = _log_softmax_sublane(x3d)
    else:
        out = _log_softmax_sublane(x.reshape(pre, red, post))
    return out.reshape(shape)


def _make_fused_kernel(axes):
    n = len(axes)

    def kernel(*refs):
        for x_ref, o_ref, ax in zip(refs[:n], refs[n:], axes):
            x = x_ref[...].astype(jnp.float32)
            m = jnp.max(x, axis=ax, keepdims=True)
            shifted = x - m
            lse = jnp.log(jnp.sum(jnp.exp(shifted), axis=ax, keepdims=True))
            o_ref[...] = (shifted - lse).astype(o_ref.dtype)

    return kernel


_FUSE_TOTAL_BYTES = 512 * 1024   # f32-equivalent working-set threshold


def model_forward(x, y, z, w):
    """Mirrors Model.forward: LogSoftmax over dim = 1, 1, 0, 2 respectively."""
    pairs = ((x, 1), (y, 1), (z, 0), (w, 2))
    if sum(4 * a.size for a, _ in pairs) <= _FUSE_TOTAL_BYTES:
        # Tiny inputs: fuse all four log-softmaxes into ONE pallas_call with
        # whole arrays resident in VMEM (removes 3 kernel launches).
        arrs, axes = [], []
        for a, d in pairs:
            pre, red, post = _canonicalize(a, d)
            if post == 1:
                arrs.append(a.reshape(pre, red))
                axes.append(-1)
            else:
                arrs.append(a.reshape(pre, red, post))
                axes.append(-2)
        outs = pl.pallas_call(
            _make_fused_kernel(tuple(axes)),
            out_shape=tuple(jax.ShapeDtypeStruct(a.shape, a.dtype) for a in arrs),
        )(*arrs)
        return tuple(o.reshape(a.shape) for o, (a, _) in zip(outs, pairs))
    # Larger inputs: independent tiled streamers (HBM-roofline bound).
    return tuple(pallas_log_softmax(a, d) for a, d in pairs)


if __name__ == "__main__":
    key = jax.random.PRNGKey(0)
    kx, ky, kz, kw, k1, k2, k3 = jax.random.split(key, 7)

    # Small shapes consistent with the module (dims 1 / 1 / 0 / 2 must exist).
    x = jax.random.normal(kx, (2, 16), dtype=jnp.float32)         # dim=1 (last axis)
    y = jax.random.normal(ky, (2, 8, 16), dtype=jnp.float32)      # dim=1 (middle axis)
    z = jax.random.normal(kz, (8, 16), dtype=jnp.float32)         # dim=0 (first axis)
    w = jax.random.normal(kw, (2, 4, 16, 8), dtype=jnp.float32)   # dim=2

    outs = jax.block_until_ready(model_forward(x, y, z, w))
    refs = (
        jax.nn.log_softmax(x, axis=1),
        jax.nn.log_softmax(y, axis=1),
        jax.nn.log_softmax(z, axis=0),
        jax.nn.log_softmax(w, axis=2),
    )
    for o, r in zip(outs, refs):
        assert o.shape == r.shape and o.dtype == r.dtype
        assert jnp.allclose(o, r, atol=1e-5, rtol=1e-5)

    # Also exercise the tiled (non-fused) code paths with modestly larger inputs.
    a = jax.random.normal(k1, (512, 512), dtype=jnp.float32)      # lane kernel
    b = jax.random.normal(k2, (64, 16, 256), dtype=jnp.float32)   # sublane kernel
    c = jax.random.normal(k3, (64, 16, 8), dtype=jnp.float32)     # packed lane-dense kernel
    for arr, d in ((a, 1), (b, 1), (c, 1)):
        got = jax.block_until_ready(pallas_log_softmax(arr, d))
        ref = jax.nn.log_softmax(arr, axis=d)
        assert jnp.allclose(got, ref, atol=1e-4, rtol=1e-4)

    print("KERNEL_OK")
</pallas_src>

<mosaic_0001>
module attributes {stable_mosaic.version = 11 : i64} {
  func.func @kernel(%arg0: memref<2x16xf32, #tpu.memory_space<vmem>>, %arg1: memref<2x8x16xf32, #tpu.memory_space<vmem>>, %arg2: memref<1x8x16xf32, #tpu.memory_space<vmem>>, %arg3: memref<8x16x8xf32, #tpu.memory_space<vmem>>, %arg4: memref<2x16xf32, #tpu.memory_space<vmem>>, %arg5: memref<2x8x16xf32, #tpu.memory_space<vmem>>, %arg6: memref<1x8x16xf32, #tpu.memory_space<vmem>>, %arg7: memref<8x16x8xf32, #tpu.memory_space<vmem>>) attributes {dimension_semantics = [], scalar_prefetch = 0 : i64, scratch_operands = 0 : i64, tpu.core_type = #tpu.core_type<tc>} {
    %c0 = arith.constant 0 : index
    %c0_0 = arith.constant 0 : index
    %0 = vector.load %arg0[%c0, %c0_0] : memref<2x16xf32, #tpu.memory_space<vmem>>, vector<2x16xf32>
    %cst = arith.constant dense<0xFF800000> : vector<2xf32>
    %1 = vector.multi_reduction <maximumf>, %0, %cst [1] : vector<2x16xf32> to vector<2xf32>
    %2 = vector.shape_cast %1 : vector<2xf32> to vector<2x1xf32>
    %3 = vector.broadcast %2 : vector<2x1xf32> to vector<2x16xf32>
    %4 = arith.subf %0, %3 : vector<2x16xf32>
    %5 = math.exp %4 : vector<2x16xf32>
    %cst_1 = arith.constant dense<0.000000e+00> : vector<2xf32>
    %6 = vector.multi_reduction <add>, %5, %cst_1 [1] : vector<2x16xf32> to vector<2xf32>
    %7 = vector.shape_cast %6 : vector<2xf32> to vector<2x1xf32>
    %8 = math.log %7 : vector<2x1xf32>
    %9 = vector.broadcast %8 : vector<2x1xf32> to vector<2x16xf32>
    %10 = arith.subf %4, %9 : vector<2x16xf32>
    %c0_2 = arith.constant 0 : index
    %c0_3 = arith.constant 0 : index
    %11 = vector.load %arg4[%c0_2, %c0_3] : memref<2x16xf32, #tpu.memory_space<vmem>>, vector<2x16xf32>
    tpu.vector_store %arg4[%c0_2, %c0_3], %10 {strides = array<i32>} : memref<2x16xf32, #tpu.memory_space<vmem>>, vector<2x16xf32>,
    %c0_4 = arith.constant 0 : index
    %c0_5 = arith.constant 0 : index
    %c0_6 = arith.constant 0 : index
    %12 = vector.load %arg1[%c0_4, %c0_5, %c0_6] : memref<2x8x16xf32, #tpu.memory_space<vmem>>, vector<2x8x16xf32>
    %cst_7 = arith.constant dense<0xFF800000> : vector<2x16xf32>
    %13 = vector.multi_reduction <maximumf>, %12, %cst_7 [1] : vector<2x8x16xf32> to vector<2x16xf32>
    %14 = vector.shape_cast %13 : vector<2x16xf32> to vector<2x1x16xf32>
    %15 = vector.broadcast %14 : vector<2x1x16xf32> to vector<2x8x16xf32>
    %16 = arith.subf %12, %15 : vector<2x8x16xf32>
    %17 = math.exp %16 : vector<2x8x16xf32>
    %cst_8 = arith.constant dense<0.000000e+00> : vector<2x16xf32>
    %18 = vector.multi_reduction <add>, %17, %cst_8 [1] : vector<2x8x16xf32> to vector<2x16xf32>
    %19 = vector.shape_cast %18 : vector<2x16xf32> to vector<2x1x16xf32>
    %20 = math.log %19 : vector<2x1x16xf32>
    %21 = vector.broadcast %20 : vector<2x1x16xf32> to vector<2x8x16xf32>
    %22 = arith.subf %16, %21 : vector<2x8x16xf32>
    %c0_9 = arith.constant 0 : index
    %c0_10 = arith.constant 0 : index
    %c0_11 = arith.constant 0 : index
    %23 = vector.load %arg5[%c0_9, %c0_10, %c0_11] : memref<2x8x16xf32, #tpu.memory_space<vmem>>, vector<2x8x16xf32>
    tpu.vector_store %arg5[%c0_9, %c0_10, %c0_11], %22 {strides = array<i32>} : memref<2x8x16xf32, #tpu.memory_space<vmem>>, vector<2x8x16xf32>,
    %c0_12 = arith.constant 0 : index
    %c0_13 = arith.constant 0 : index
    %c0_14 = arith.constant 0 : index
    %24 = vector.load %arg2[%c0_12, %c0_13, %c0_14] : memref<1x8x16xf32, #tpu.memory_space<vmem>>, vector<1x8x16xf32>
    %cst_15 = arith.constant dense<0xFF800000> : vector<1x16xf32>
    %25 = vector.multi_reduction <maximumf>, %24, %cst_15 [1] : vector<1x8x16xf32> to vector<1x16xf32>
    %26 = vector.shape_cast %25 : vector<1x16xf32> to vector<1x1x16xf32>
    %27 = vector.broadcast %26 : vector<1x1x16xf32> to vector<1x8x16xf32>
    %28 = arith.subf %24, %27 : vector<1x8x16xf32>
    %29 = math.exp %28 : vector<1x8x16xf32>
    %cst_16 = arith.constant dense<0.000000e+00> : vector<1x16xf32>
    %30 = vector.multi_reduction <add>, %29, %cst_16 [1] : vector<1x8x16xf32> to vector<1x16xf32>
    %31 = vector.shape_cast %30 : vector<1x16xf32> to vector<1x1x16xf32>
    %32 = math.log %31 : vector<1x1x16xf32>
    %33 = vector.broadcast %32 : vector<1x1x16xf32> to vector<1x8x16xf32>
    %34 = arith.subf %28, %33 : vector<1x8x16xf32>
    %c0_17 = arith.constant 0 : index
    %c0_18 = arith.constant 0 : index
    %c0_19 = arith.constant 0 : index
    %35 = vector.load %arg6[%c0_17, %c0_18, %c0_19] : memref<1x8x16xf32, #tpu.memory_space<vmem>>, vector<1x8x16xf32>
    tpu.vector_store %arg6[%c0_17, %c0_18, %c0_19], %34 {strides = array<i32>} : memref<1x8x16xf32, #tpu.memory_space<vmem>>, vector<1x8x16xf32>,
    %c0_20 = arith.constant 0 : index
    %c0_21 = arith.constant 0 : index
    %c0_22 = arith.constant 0 : index
    %36 = vector.load %arg3[%c0_20, %c0_21, %c0_22] : memref<8x16x8xf32, #tpu.memory_space<vmem>>, vector<8x16x8xf32>
    %cst_23 = arith.constant dense<0xFF800000> : vector<8x8xf32>
    %37 = vector.multi_reduction <maximumf>, %36, %cst_23 [1] : vector<8x16x8xf32> to vector<8x8xf32>
    %38 = vector.shape_cast %37 : vector<8x8xf32> to vector<8x1x8xf32>
    %39 = vector.broadcast %38 : vector<8x1x8xf32> to vector<8x16x8xf32>
    %40 = arith.subf %36, %39 : vector<8x16x8xf32>
    %41 = math.exp %40 : vector<8x16x8xf32>
    %cst_24 = arith.constant dense<0.000000e+00> : vector<8x8xf32>
    %42 = vector.multi_reduction <add>, %41, %cst_24 [1] : vector<8x16x8xf32> to vector<8x8xf32>
    %43 = vector.shape_cast %42 : vector<8x8xf32> to vector<8x1x8xf32>
    %44 = math.log %43 : vector<8x1x8xf32>
    %45 = vector.broadcast %44 : vector<8x1x8xf32> to vector<8x16x8xf32>
    %46 = arith.subf %40, %45 : vector<8x16x8xf32>
    %c0_25 = arith.constant 0 : index
    %c0_26 = arith.constant 0 : index
    %c0_27 = arith.constant 0 : index
    %47 = vector.load %arg7[%c0_25, %c0_26, %c0_27] : memref<8x16x8xf32, #tpu.memory_space<vmem>>, vector<8x16x8xf32>
    tpu.vector_store %arg7[%c0_25, %c0_26, %c0_27], %46 {strides = array<i32>} : memref<8x16x8xf32, #tpu.memory_space<vmem>>, vector<8x16x8xf32>,
    return
  }
}

</mosaic_0001>

<bundles_post_ra>
// kernel: tpu_custom_call.1
= control target key start
LH: loop header
LB: loop body
LE: loop exit
PB: predicated region body
PF: predicated region fallthrough
CT: control target
= control target key end

     0   :  { %13 = vsyncpa [#allocation3], 0  ;;  %vm24_vm0 = vcmask 123904   ;;  %s964_s0 = inlined_call_operand.vmem [shape: f32[2,16], index: 0, kind: input, shape index: {}]   ;;  %s965_s1 = inlined_call_operand.vmem [shape: f32[2,8,16], index: 1, kind: input, shape index: {}]   ;;  %s966_s2 = inlined_call_operand.vmem [shape: f32[1,8,16], index: 2, kind: input, shape index: {}]   ;;  %s967_s3 = inlined_call_operand.vmem [shape: f32[8,16,8], index: 3, kind: input, shape index: {}]   ;;  %s968_s4 = inlined_call_operand.hbm [shape: f32[2,16], index: 4, kind: output, shape index: {0}]   ;;  %s969_s5 = inlined_call_operand.hbm [shape: f32[2,8,16], index: 5, kind: output, shape index: {1}]   ;;  %s970_s6 = inlined_call_operand.hbm [shape: f32[1,8,16], index: 6, kind: output, shape index: {2}]   ;;  %s971_s7 = inlined_call_operand.vmem [shape: f32[8,16,8], index: 7, kind: output, shape index: {3}]  }
   0x1   :  { %v596_v0 = vld [vmem:[%s964_s0] sm:$0x3] }
   0x2   :  { %14 = vsyncpa [#allocation5], 0  ;;  %v25_v1 = vsel %vm24_vm0, %v596_v0, -inf  ;;  %v603_v2 = vld [vmem:[%s967_s3] sm:$0xff]  ;;  %v608_v3 = vld [vmem:[%s967_s3 + $0x8] sm:$0xff]  ;;  %vm121_vm1 = vcmask 64512  }
   0x3   :  { %26 = vmax.xlane.f32.xlu0 %v25_v1  ;;  %v613_v4 = vld [vmem:[%s967_s3 + $0x10] sm:$0xff]  ;;  %v618_v5 = vld [vmem:[%s967_s3 + $0x18] sm:$0xff]  ;;  %v623_v6 = vld [vmem:[%s967_s3 + $0x20] sm:$0xff]  ;;  %v122_v8 = vsel %vm121_vm1, %v603_v2, -inf  ;;  %v123_v9 = vsel %vm121_vm1, %v608_v3, -inf  ;;  %vm40_vm2 = vcmask 130048  }
   0x4   :  { %v628_v7 = vld [vmem:[%s967_s3 + $0x28] sm:$0xff]  ;;  %v131_v10 = vsel %vm121_vm1, %v613_v4, -inf  ;;  %v639_v11 = vld [vmem:[%s965_s1] sm:$0xff]  ;;  %v649_v13 = vld [vmem:[%s967_s3 + $0x30] sm:$0xff]  ;;  %v124_v14 = vmax.f32 %v122_v8, %v123_v9  ;;  %v132_v15 = vsel %vm121_vm1, %v618_v5, -inf  ;;  %v140_v16 = vsel %vm121_vm1, %v623_v6, -inf }
   0x5   :  { %v644_v12 = vld [vmem:[%s965_s1 + $0x8] sm:$0xff]  ;;  %v41_v17 = vsel %vm40_vm2, %v639_v11, -inf  ;;  %v662_v19 = vld [vmem:[%s967_s3 + $0x38] sm:$0xff]  ;;  %v133_v20 = vmax.f32 %v131_v10, %v132_v15  ;;  %v141_v21 = vsel %vm121_vm1, %v628_v7, -inf  ;;  %v669_v24 = vld [vmem:[%s967_s3 + $0x40] sm:$0xff]  ;;  %v149_v29 = vsel %vm121_vm1, %v649_v13, -inf }
   0x6   :  { %v48_v18 = vsel %vm40_vm2, %v644_v12, -inf  ;;  %v42_v22 = vrot.slane %v41_v17, 4  ;;  %v674_v25 = vld [vmem:[%s967_s3 + $0x48] sm:$0xff]  ;;  %v125_v26 = vrot.slane %v124_v14, 4  ;;  %v142_v27 = vmax.f32 %v140_v16, %v141_v21  ;;  %v683_v33 = vld [vmem:[%s967_s3 + $0x50] sm:$0xff]  ;;  %v692_v42 = vld [vmem:[%s967_s3 + $0x58] sm:$0xff] }
   0x7   :  { %v49_v23 = vrot.slane %v48_v18, 4  ;;  %v134_v28 = vrot.slane %v133_v20, 4  ;;  %v150_v30 = vsel %vm121_vm1, %v662_v19, -inf  ;;  %v158_v38 = vsel %vm121_vm1, %v669_v24, -inf }
   0x8   :  { %v43_v31 = vmax.f32 %v41_v17, %v42_v22  ;;  %v126_v34 = vmax.f32 %v124_v14, %v125_v26  ;;  %v143_v35 = vrot.slane %v142_v27, 4  ;;  %v151_v37 = vmax.f32 %v149_v29, %v150_v30  ;;  %v701_v14 = vld [vmem:[%s967_s3 + $0x60] sm:$0xff]  ;;  %v726_v30 = vld [vmem:[%s967_s3 + $0x78] sm:$0xff] }
   0x9   :  { %v50_v32 = vmax.f32 %v48_v18, %v49_v23  ;;  %v135_v36 = vmax.f32 %v133_v20, %v134_v28  ;;  %v159_v39 = vsel %vm121_vm1, %v674_v25, -inf  ;;  %v167_v48 = vsel %vm121_vm1, %v683_v33, -inf  ;;  %v709_v18 = vld [vmem:[%s967_s3 + $0x68] sm:$0xff] }
   0xa   :  { %v44_v40 = vrot.slane %v43_v31, 2  ;;  %v127_v43 = vrot.slane %v126_v34, 2  ;;  %v144_v44 = vmax.f32 %v142_v27, %v143_v35  ;;  %v152_v46 = vrot.slane %v151_v37, 4 }
   0xb   :  { %v51_v41 = vrot.slane %v50_v32, 2  ;;  %v136_v45 = vrot.slane %v135_v36, 2  ;;  %v160_v47 = vmax.f32 %v158_v38, %v159_v39  ;;  %v168_v56 = vsel %vm121_vm1, %v692_v42, -inf }
   0xc   :  { %v45_v49 = vmax.f32 %v43_v31, %v44_v40  ;;  %v128_v51 = vmax.f32 %v126_v34, %v127_v43  ;;  %v145_v52 = vrot.slane %v144_v44, 2  ;;  %v153_v54 = vmax.f32 %v151_v37, %v152_v46 }
   0xd   :  { %v52_v50 = vmax.f32 %v50_v32, %v51_v41  ;;  %v137_v53 = vmax.f32 %v135_v36, %v136_v45  ;;  %v161_v55 = vrot.slane %v160_v47, 4  ;;  %v169_v1 = vmax.f32 %v167_v48, %v168_v56 }
   0xe   :  { %v46_v57 = vrot.slane %v45_v49, 1  ;;  %v129_v59 = vrot.slane %v128_v51, 1  ;;  %v146_v60 = vmax.f32 %v144_v44, %v145_v52  ;;  %v154_v62 = vrot.slane %v153_v54, 2 }
   0xf   :  { %v53_v58 = vrot.slane %v52_v50, 1  ;;  %v138_v61 = vrot.slane %v137_v53, 1  ;;  %v162_v63 = vmax.f32 %v160_v47, %v161_v55  ;;  %v170_v28 = vrot.slane %v169_v1, 4 }
  0x10   :  { %v47_v9 = vmax.f32 %v45_v49, %v46_v57  ;;  %v130_v15 = vmax.f32 %v128_v51, %v129_v59  ;;  %v147_v16 = vrot.slane %v146_v60, 1  ;;  %v155_v21 = vmax.f32 %v153_v54, %v154_v62 }
  0x11   :  { %v54_v10 = vmax.f32 %v52_v50, %v53_v58  ;;  %v139_v20 = vmax.f32 %v137_v53, %v138_v61  ;;  %v163_v22 = vrot.slane %v162_v63, 2  ;;  %v171_v35 = vmax.f32 %v169_v1, %v170_v28 }
  0x12   :  { %v712_v23 = vsub.f32 %v639_v11, %v47_v9  ;;  %v148_v27 = vmax.f32 %v146_v60, %v147_v16  ;;  %v156_v31 = vrot.slane %v155_v21, 1  ;;  %v177_v36 = vsel %vm121_vm1, %v709_v18, -inf }
  0x13   :  { %v715_v26 = vsub.f32 %v644_v12, %v54_v10  ;;  %v164_v11 = vmax.f32 %v162_v63, %v163_v22  ;;  %v176_v12 = vsel %vm121_vm1, %v701_v14, -inf  ;;  %v172_v40 = vrot.slane %v171_v35, 2 }
  0x14   :  { %v57_v32 = vmul.f32 1.442695, %v712_v23  ;;  %v157_v37 = vmax.f32 %v155_v21, %v156_v31  ;;  %v178_v39 = vmax.f32 %v176_v12, %v177_v36  ;;  %v186_v43 = vsel %vm121_vm1, %v726_v30, -inf }
  0x15   :  { %v59_v34 = vmul.f32 1.442695, %v715_v26  ;;  %v165_v38 = vrot.slane %v164_v11, 1  ;;  %v173_v47 = vmax.f32 %v171_v35, %v172_v40  ;;  %v739_v48 = vsub.f32 %v603_v2, %v130_v15 }
  0x16   :  { %v179_v45 = vrot.slane %v178_v39, 4  ;;  %v742_v49 = vsub.f32 %v608_v3, %v130_v15  ;;  %v745_v50 = vsub.f32 %v613_v4, %v139_v20  ;;  %v748_v53 = vsub.f32 %v618_v5, %v139_v20 }
  0x17   :  { %v166_v44 = vmax.f32 %v164_v11, %v165_v38  ;;  %v174_v54 = vrot.slane %v173_v47, 1  ;;  %v751_v55 = vsub.f32 %v623_v6, %v148_v27  ;;  %v754_v56 = vsub.f32 %v628_v7, %v148_v27 }
  0x18   :  { %v180_v51 = vmax.f32 %v178_v39, %v179_v45  ;;  %v757_v2 = vsub.f32 %v649_v13, %v157_v37  ;;  %v760_v4 = vsub.f32 %v662_v19, %v157_v37  ;;  %v210_v59 = vmul.f32 1.442695, %v739_v48  ;;  %v800_v39 = vld [vmem:[%s966_s2] sm:$0xff]  ;;  %s548_s2 = smov [#allocation4]  }
  0x19   :  { %v763_v58 = vsub.f32 %v669_v24, %v166_v44  ;;  %v175_v5 = vmax.f32 %v173_v47, %v174_v54  ;;  %v212_v6 = vmul.f32 1.442695, %v742_v49  ;;  %v214_v60 = vmul.f32 1.442695, %v745_v50  ;;  %s377_s14 = sshll.u32 %s548_s2, 4  ;;  %s830_s14 = int_to_ptr.vmem [resolvable:$true] %s377_s14 }
  0x1a   :  { %v181_v3 = vrot.slane %v180_v51, 2  ;;  %v769_v13 = vsub.f32 %v674_v25, %v166_v44  ;;  %v216_v62 = vmul.f32 1.442695, %v748_v53  ;;  %v218_v63 = vmul.f32 1.442695, %v751_v55  ;;  %s478_s15 = scalar_lea.vmem %s830_s14, 256  ;;  %p483_p1 = scmp.lt.s32.totalorder %s830_s14, %s830_s14 }
  0x1b   :  { %v773_v19 = vsub.f32 %v683_v33, %v175_v5  ;;  %v776_v24 = vsub.f32 %v692_v42, %v175_v5  ;;  %v220_v10 = vmul.f32 1.442695, %v754_v56  ;;  %v222_v16 = vmul.f32 1.442695, %v757_v2  ;;  %p479_p0 = scmp.ne.s32.totalorder %s830_s14, %s478_s15  ;;  %p484_p2 = scmp.lt.s32.totalorder %s478_s15, %s478_s15 }
  0x1c   :  { %v182_v7 = vmax.f32 %v180_v51, %v181_v3  ;;  %v224_v33 = vmul.f32 1.442695, %v760_v4  ;;  %v228_v35 = vmul.f32 1.442695, %v769_v13  ;;  %v84_v47 = vsel %vm40_vm2, %v800_v39, -inf }
  0x1d   :  { %v230_v38 = vmul.f32 1.442695, %v773_v19  ;;  %v232_v40 = vmul.f32 1.442695, %v776_v24  ;;  %v85_v54 = vrot.slane %v84_v47, 4  ;;  %p485_p3 = por %p484_p2, %p483_p1 }
  0x1f   :  { %p486_p4 = pnand %p485_p3, %p479_p0 }
  0x90   :  { %v27_v8 = vpop.xlane.xlu0 %26 }
  0x91   :  { %v704_v17 = vsub.f32 %v596_v0, %v27_v8  ;;  %v721_v0 = vld [vmem:[%s967_s3 + $0x70] sm:$0xff]  ;;  %v183_v8 = vrot.slane %v182_v7, 1 }
  0x92   :  { %v185_v41 = vsel %vm121_vm1, %v721_v0, -inf }
  0x93   :  { %v29_v29 = vmul.f32 1.442695, %v704_v17  ;;  %v187_v46 = vmax.f32 %v185_v41, %v186_v43  ;;  %v184_v21 = vmax.f32 %v182_v7, %v183_v8  ;;  %v86_v8 = vmax.f32 %v84_v47, %v85_v54 }
  0x95   :  { %414 = vpow2.f32 %v29_v29  ;;  %v188_v52 = vrot.slane %v187_v46, 4  ;;  %v226_v29 = vmul.f32 1.442695, %v763_v58  ;;  %v787_v12 = vsub.f32 %v701_v14, %v184_v21 }
  0x96   :  { %416 = vpow2.f32 %v57_v32  ;;  %v790_v32 = vsub.f32 %v709_v18, %v184_v21 }
  0x97   :  { %418 = vpow2.f32 %v59_v34  ;;  %v189_v57 = vmax.f32 %v187_v46, %v188_v52 }
  0x98   :  { %420 = vpow2.f32 %v210_v59  ;;  %v236_v43 = vmul.f32 1.442695, %v790_v32 }
  0x99   :  { %v190_v61 = vrot.slane %v189_v57, 2  ;;  %422 = vpow2.f32 %v212_v6 }
  0x9a   :  { %424 = vpow2.f32 %v214_v60 }
  0x9b   :  { %v191_v9 = vmax.f32 %v189_v57, %v190_v61  ;;  %426 = vpow2.f32 %v216_v62 }
  0x9c   :  { %428 = vpow2.f32 %v218_v63 }
  0x9d   :  { %v192_v22 = vrot.slane %v191_v9, 1  ;;  %430 = vpow2.f32 %v220_v10 }
  0x9e   :  { %432 = vpow2.f32 %v222_v16 }
  0x9f   :  { %v415_v1 = vpop.eup %414  ;;  %v193_v11 = vmax.f32 %v191_v9, %v192_v22  ;;  %434 = vpow2.f32 %v224_v33  ;;  %v87_v33 = vrot.slane %v86_v8, 2 }
  0xa0   :  { %v417_v15 = vpop.eup %416  ;;  %v31_v25 = vsel %vm24_vm0, %v415_v1, 0.0  ;;  %436 = vpow2.f32 %v226_v29 }
  0xa1   :  { %v419_v20 = vpop.eup %418  ;;  %32 = vadd.xlane.f32.xlu0 %v31_v25  ;;  %v61_v42 = vsel %vm40_vm2, %v417_v15, 0.0  ;;  %v794_v37 = vsub.f32 %v721_v0, %v193_v11  ;;  %v803_v18 = vsub.f32 %v726_v30, %v193_v11  ;;  %v234_v0 = vmul.f32 1.442695, %v787_v12 }
  0xa2   :  { %v62_v27 = vrot.slane %v61_v42, 4  ;;  %v68_v28 = vsel %vm40_vm2, %v419_v20, 0.0  ;;  %v421_v44 = vpop.eup %420  ;;  %438 = vpow2.f32 %v228_v35 }
  0xa3   :  { %v69_v31 = vrot.slane %v68_v28, 4  ;;  %v238_v46 = vmul.f32 1.442695, %v794_v37  ;;  %v423_v51 = vpop.eup %422  ;;  %440 = vpow2.f32 %v230_v38  ;;  %v242_v52 = vsel %vm121_vm1, %v421_v44, 0.0 }
  0xa4   :  { %v63_v34 = vadd.f32 %v62_v27, %v61_v42  ;;  %v425_v3 = vpop.eup %424  ;;  %442 = vpow2.f32 %v232_v40  ;;  %v240_v5 = vmul.f32 1.442695, %v803_v18  ;;  %v243_v59 = vsel %vm121_vm1, %v423_v51, 0.0 }
  0xa5   :  { %v70_v36 = vadd.f32 %v69_v31, %v68_v28  ;;  %v427_v6 = vpop.eup %426  ;;  %444 = vpow2.f32 %v234_v0  ;;  %v244_v7 = vadd.f32 %v243_v59, %v242_v52  ;;  %v251_v61 = vsel %vm121_vm1, %v425_v3, 0.0 }
  0xa6   :  { %v64_v14 = vrot.slane %v63_v34, 2  ;;  %v429_v62 = vpop.eup %428  ;;  %446 = vpow2.f32 %v236_v43  ;;  %v252_v1 = vsel %vm121_vm1, %v427_v6, 0.0  ;;  %v88_v31 = vmax.f32 %v86_v8, %v87_v33 }
  0xa7   :  { %v71_v41 = vrot.slane %v70_v36, 2  ;;  %448 = vpow2.f32 %v238_v46  ;;  %v245_v10 = vrot.slane %v244_v7, 4  ;;  %v253_v15 = vadd.f32 %v252_v1, %v251_v61  ;;  %v431_v25 = vpop.eup %430 }
  0xa8   :  { %v65_v45 = vadd.f32 %v64_v14, %v63_v34  ;;  %v260_v16 = vsel %vm121_vm1, %v429_v62, 0.0  ;;  %v433_v20 = vpop.eup %432  ;;  %v261_v22 = vsel %vm121_vm1, %v431_v25, 0.0  ;;  %v89_v0 = vrot.slane %v88_v31, 1 }
  0xa9   :  { %v72_v30 = vadd.f32 %v71_v41, %v70_v36  ;;  %v246_v42 = vadd.f32 %v245_v10, %v244_v7  ;;  %v254_v21 = vrot.slane %v253_v15, 4  ;;  %v435_v27 = vpop.eup %434  ;;  %v262_v28 = vadd.f32 %v261_v22, %v260_v16 }
  0xaa   :  { %v66_v57 = vrot.slane %v65_v45, 1  ;;  %v269_v29 = vsel %vm121_vm1, %v433_v20, 0.0  ;;  %v437_v11 = vpop.eup %436  ;;  %v270_v36 = vsel %vm121_vm1, %v435_v27, 0.0  ;;  %v90_v6 = vmax.f32 %v88_v31, %v89_v0 }
  0xab   :  { %v73_v60 = vrot.slane %v72_v30, 1  ;;  %v247_v34 = vrot.slane %v246_v42, 2  ;;  %v255_v35 = vadd.f32 %v254_v21, %v253_v15  ;;  %v263_v14 = vrot.slane %v262_v28, 4 }
  0xac   :  { %v67_v63 = vadd.f32 %v66_v57, %v65_v45  ;;  %v439_v38 = vpop.eup %438  ;;  %v271_v40 = vadd.f32 %v270_v36, %v269_v29  ;;  %v278_v41 = vsel %vm121_vm1, %v437_v11, 0.0 }
  0xad   :  { %v74_v9 = vadd.f32 %v73_v60, %v72_v30  ;;  %v441_v43 = vpop.eup %440  ;;  %v248_v44 = vadd.f32 %v247_v34, %v246_v42  ;;  %v256_v45 = vrot.slane %v255_v35, 2  ;;  %v279_v46 = vsel %vm121_vm1, %v439_v38, 0.0 }
  0xae   :  { %450 = vlog2.f32 %v67_v63  ;;  %v443_v47 = vpop.eup %442  ;;  %v264_v51 = vadd.f32 %v263_v14, %v262_v28  ;;  %v272_v30 = vrot.slane %v271_v40, 4  ;;  %v280_v52 = vadd.f32 %v279_v46, %v278_v41 }
  0xaf   :  { %452 = vlog2.f32 %v74_v9  ;;  %v287_v54 = vsel %vm121_vm1, %v441_v43, 0.0  ;;  %v445_v3 = vpop.eup %444  ;;  %v249_v57 = vrot.slane %v248_v44, 1  ;;  %v288_v59 = vsel %vm121_vm1, %v443_v47, 0.0 }
  0xb0   :  { %454 = vpow2.f32 %v240_v5  ;;  %v257_v5 = vadd.f32 %v256_v45, %v255_v35  ;;  %v447_v60 = vpop.eup %446  ;;  %v265_v7 = vrot.slane %v264_v51, 2  ;;  %v273_v61 = vadd.f32 %v272_v30, %v271_v40 }
  0xb1   :  { %v281_v62 = vrot.slane %v280_v52, 4  ;;  %v289_v63 = vadd.f32 %v288_v59, %v287_v54  ;;  %v449_v1 = vpop.eup %448  ;;  %v250_v8 = vadd.f32 %v249_v57, %v248_v44  ;;  %v296_v10 = vsel %vm121_vm1, %v445_v3, 0.0 }
  0xb2   :  { %v258_v9 = vrot.slane %v257_v5, 1  ;;  %v297_v15 = vsel %vm121_vm1, %v447_v60, 0.0  ;;  %v266_v16 = vadd.f32 %v265_v7, %v264_v51  ;;  %v274_v33 = vrot.slane %v273_v61, 2 }
  0xb3   :  { %v282_v20 = vadd.f32 %v281_v62, %v280_v52  ;;  %v290_v42 = vrot.slane %v289_v63, 4  ;;  %v298_v28 = vadd.f32 %v297_v15, %v296_v10  ;;  %v305_v29 = vsel %vm121_vm1, %v449_v1, 0.0 }
  0xb4   :  { %v259_v27 = vadd.f32 %v258_v9, %v257_v5  ;;  %v267_v34 = vrot.slane %v266_v16, 1  ;;  %v275_v35 = vadd.f32 %v274_v33, %v273_v61  ;;  %456 = vlog2.f32 %v250_v8 }
  0xb5   :  { %v283_v36 = vrot.slane %v282_v20, 2  ;;  %v291_v14 = vadd.f32 %v290_v42, %v289_v63  ;;  %v299_v40 = vrot.slane %v298_v28, 4 }
  0xb6   :  { %v268_v43 = vadd.f32 %v267_v34, %v266_v16  ;;  %v276_v44 = vrot.slane %v275_v35, 1  ;;  %458 = vlog2.f32 %v259_v27 }
  0xb7   :  { %v284_v45 = vadd.f32 %v283_v36, %v282_v20  ;;  %v292_v46 = vrot.slane %v291_v14, 2 }
  0xb8   :  { %v451_v25 = vpop.eup %450  ;;  %v277_v51 = vadd.f32 %v276_v44, %v275_v35 }
  0xb9   :  { %v453_v21 = vpop.eup %452  ;;  %v76_v22 = vmul.f32 0.6931472, %v451_v25  ;;  %v285_v30 = vrot.slane %v284_v45, 1 }
  0xba   :  { %v455_v31 = vpop.eup %454  ;;  %v78_v11 = vmul.f32 0.6931472, %v453_v21 }
  0xbb   :  { %v79_v38 = vsub.f32 %v712_v23, %v76_v22  ;;  %v306_v41 = vsel %vm121_vm1, %v455_v31, 0.0  ;;  %v300_v23 = vadd.f32 %v299_v40, %v298_v28 }
  0xbc   :  { %v80_v0 = vsub.f32 %v715_v26, %v78_v11  ;;  %v307_v47 = vadd.f32 %v306_v41, %v305_v29  ;;  %v835_v26 = vsub.f32 %v800_v39, %v90_v6 }
  0xbd   :  { %81 = vst.msk [vmem:[#allocation4] sm:$0xff] %vm40_vm2, %v79_v38 }
  0xbe   :  { %82 = vst.msk [vmem:[#allocation4 + $0x8] sm:$0xff] %vm40_vm2, %v80_v0 }
  0xbf   :  { %489 = shalt.err (!%p486_p4)
}
  0xc0   :  { %s490_s18 = scalar_lea.hbm %s969_s5, 256 }
  0xc1   :  { %p491_p5 = scmp.ne.s32.totalorder %s969_s5, %s490_s18  ;;  %p494_p6 = scmp.lt.u32.totalorder %s490_s18, %s969_s5 }
  0xc3   :  { %p496_p7 = pnand %p494_p6, %p491_p5 }
  0xc5   :  { %499 = shalt.err (!%p496_p7)
}
  0xc6   :  { %s549_s22 = smov 128   ;;  %s550_s23 = smov 8   ;;  %v293_v39 = vadd.f32 %v292_v46, %v291_v14  ;;  %v301_v52 = vrot.slane %v300_v23, 2  ;;  %v308_v54 = vrot.slane %v307_v47, 4  ;;  %460 = vlog2.f32 %v268_v43  ;;  %v457_v1 = vpop.eup %456 }
  0xc7   :  { %383 = dma.vmem_to_hbm [thread:$0]  %s830_s14, 256, %s969_s5, [#allocation5], %s549_s22, %s549_s22, %s550_s23   ;;  %v286_v3 = vadd.f32 %v285_v30, %v284_v45  ;;  %462 = vlog2.f32 %v277_v51  ;;  %v92_v57 = vmul.f32 1.442695, %v835_v26  ;;  %v459_v9 = vpop.eup %458  ;;  %v315_v10 = vmul.f32 0.6931472, %v457_v1 }
  0xc8   :  { %v294_v5 = vrot.slane %v293_v39, 1  ;;  %v302_v59 = vadd.f32 %v301_v52, %v300_v23  ;;  %v309_v6 = vadd.f32 %v308_v54, %v307_v47  ;;  %v317_v16 = vmul.f32 0.6931472, %v459_v9  ;;  %s551_s29 = smov [#allocation6]  }
  0xc9   :  { %464 = vlog2.f32 %v286_v3  ;;  %v330_v42 = vsub.f32 %v739_v48, %v315_v10  ;;  %v331_v21 = vsub.f32 %v742_v49, %v315_v10  ;;  %s390_s30 = sshll.u32 %s551_s29, 4  ;;  %s391_s30 = int_to_ptr.vmem [resolvable:$true] %s390_s30 }
  0xca   :  { %v295_v60 = vadd.f32 %v294_v5, %v293_v39  ;;  %v303_v7 = vrot.slane %v302_v59, 1  ;;  %v310_v61 = vrot.slane %v309_v6, 2  ;;  %466 = vpow2.f32 %v92_v57  ;;  %s500_s8 = scalar_lea.vmem %s391_s30, 128  ;;  %p505_p9 = scmp.lt.s32.totalorder %s391_s30, %s391_s30 }
  0xcb   :  { %v332_v27 = vsub.f32 %v745_v50, %v317_v16  ;;  %v333_v28 = vsub.f32 %v748_v53, %v317_v16  ;;  %346 = vst.msk [vmem:[%s971_s7] sm:$0xff] %vm121_vm1, %v330_v42  ;;  %347 = vst.msk [vmem:[%s971_s7 + $0x8] sm:$0xff] %vm121_vm1, %v331_v21  ;;  %p501_p8 = scmp.ne.s32.totalorder %s391_s30, %s500_s8  ;;  %p506_p10 = scmp.lt.s32.totalorder %s500_s8, %s500_s8 }
  0xcc   :  { %v304_v62 = vadd.f32 %v303_v7, %v302_v59  ;;  %v311_v63 = vadd.f32 %v310_v61, %v309_v6  ;;  %468 = vlog2.f32 %v295_v60 }
  0xcd   :  { %348 = vst.msk [vmem:[%s971_s7 + $0x10] sm:$0xff] %vm121_vm1, %v332_v27  ;;  %349 = vst.msk [vmem:[%s971_s7 + $0x18] sm:$0xff] %vm121_vm1, %v333_v28  ;;  %p507_p11 = por %p506_p10, %p505_p9 }
  0xce   :  { %v312_v8 = vrot.slane %v311_v63, 1  ;;  %470 = vlog2.f32 %v304_v62 }
  0xcf   :  { %p508_p12 = pnand %p507_p11, %p501_p8 }
  0xd0   :  { %v461_v15 = vpop.eup %460  ;;  %v313_v25 = vadd.f32 %v312_v8, %v311_v63 }
  0xd1   :  { %v463_v33 = vpop.eup %462  ;;  %v319_v20 = vmul.f32 0.6931472, %v461_v15 }
  0xd2   :  { %v321_v22 = vmul.f32 0.6931472, %v463_v33  ;;  %472 = vlog2.f32 %v313_v25 }
  0xd3   :  { %v465_v29 = vpop.eup %464  ;;  %v334_v31 = vsub.f32 %v751_v55, %v319_v20  ;;  %v335_v11 = vsub.f32 %v754_v56, %v319_v20 }
  0xd4   :  { %v467_v48 = vpop.eup %466  ;;  %v323_v49 = vmul.f32 0.6931472, %v465_v29  ;;  %v336_v50 = vsub.f32 %v757_v2, %v321_v22  ;;  %v337_v53 = vsub.f32 %v760_v4, %v321_v22 }
  0xd5   :  { %350 = vst.msk [vmem:[%s971_s7 + $0x20] sm:$0xff] %vm121_vm1, %v334_v31  ;;  %351 = vst.msk [vmem:[%s971_s7 + $0x28] sm:$0xff] %vm121_vm1, %v335_v11  ;;  %v94_v55 = vsel %vm40_vm2, %v467_v48, 0.0 }
  0xd6   :  { %v469_v56 = vpop.eup %468  ;;  %v338_v2 = vsub.f32 %v763_v58, %v323_v49  ;;  %v339_v4 = vsub.f32 %v769_v13, %v323_v49  ;;  %352 = vst.msk [vmem:[%s971_s7 + $0x30] sm:$0xff] %vm121_vm1, %v336_v50  ;;  %353 = vst.msk [vmem:[%s971_s7 + $0x38] sm:$0xff] %vm121_vm1, %v337_v53  ;;  %v95_v34 = vrot.slane %v94_v55, 4 }
  0xd7   :  { %v325_v35 = vmul.f32 0.6931472, %v469_v56 }
  0xd8   :  { %v471_v36 = vpop.eup %470  ;;  %354 = vst.msk [vmem:[%s971_s7 + $0x40] sm:$0xff] %vm121_vm1, %v338_v2  ;;  %355 = vst.msk [vmem:[%s971_s7 + $0x48] sm:$0xff] %vm121_vm1, %v339_v4  ;;  %v96_v58 = vadd.f32 %v95_v34, %v94_v55 }
  0xd9   :  { %v327_v13 = vmul.f32 0.6931472, %v471_v36  ;;  %v340_v38 = vsub.f32 %v773_v19, %v325_v35  ;;  %v341_v14 = vsub.f32 %v776_v24, %v325_v35 }
  0xda   :  { %v97_v40 = vrot.slane %v96_v58, 2 }
  0xdb   :  { %v342_v41 = vsub.f32 %v787_v12, %v327_v13  ;;  %v343_v0 = vsub.f32 %v790_v32, %v327_v13  ;;  %356 = vst.msk [vmem:[%s971_s7 + $0x50] sm:$0xff] %vm121_vm1, %v340_v38  ;;  %357 = vst.msk [vmem:[%s971_s7 + $0x58] sm:$0xff] %vm121_vm1, %v341_v14 }
  0xdc   :  { %v473_v43 = vpop.eup %472  ;;  %v98_v44 = vadd.f32 %v97_v40, %v96_v58 }
  0xdd   :  { %v329_v19 = vmul.f32 0.6931472, %v473_v43  ;;  %358 = vst.msk [vmem:[%s971_s7 + $0x60] sm:$0xff] %vm121_vm1, %v342_v41  ;;  %359 = vst.msk [vmem:[%s971_s7 + $0x68] sm:$0xff] %vm121_vm1, %v343_v0 }
  0xde   :  { %v99_v24 = vrot.slane %v98_v44, 1 }
  0xdf   :  { %v344_v12 = vsub.f32 %v794_v37, %v329_v19  ;;  %v345_v32 = vsub.f32 %v803_v18, %v329_v19 }
  0xe0   :  { %v100_v45 = vadd.f32 %v99_v24, %v98_v44 }
  0xe1   :  { %360 = vst.msk [vmem:[%s971_s7 + $0x70] sm:$0xff] %vm121_vm1, %v344_v12  ;;  %361 = vst.msk [vmem:[%s971_s7 + $0x78] sm:$0xff] %vm121_vm1, %v345_v32 }
  0xe2   :  { %474 = vlog2.f32 %v100_v45 }
  0xec   :  { %v475_v46 = vpop.eup %474 }
  0xed   :  { %v102_v23 = vmul.f32 0.6931472, %v475_v46 }
  0xef   :  { %v103_v37 = vsub.f32 %v835_v26, %v102_v23 }
  0xf1   :  { %104 = vst.msk [vmem:[#allocation6] sm:$0xff] %vm40_vm2, %v103_v37 }
  0xf2   :  { %511 = shalt.err (!%p508_p12)
}
  0xf3   :  { %s512_s7 = scalar_lea.hbm %s970_s6, 128 }
  0xf4   :  { %p513_p13 = scmp.ne.s32.totalorder %s970_s6, %s512_s7  ;;  %p516_p0 = scmp.lt.u32.totalorder %s512_s7, %s970_s6 }
  0xf6   :  { %p518_p1 = pnand %p516_p0, %p513_p13 }
  0xf8   :  { %521 = shalt.err (!%p518_p1)
}
  0xf9   :  { %393 = dma.vmem_to_hbm [thread:$0]  %s391_s30, 128, %s970_s6, [#allocation5]  }
  0xfa   :  { %s552_s14 = smov [#allocation2]  }
  0xfb   :  { %s368_s15 = sshll.u32 %s552_s14, 4  ;;  %s369_s15 = int_to_ptr.vmem [resolvable:$true] %s368_s15 }
  0xfc   :  { %s522_s16 = scalar_lea.vmem %s369_s15, 32  ;;  %p527_p3 = scmp.lt.s32.totalorder %s369_s15, %s369_s15 }
  0xfd   :  { %p523_p2 = scmp.ne.s32.totalorder %s369_s15, %s522_s16  ;;  %p528_p4 = scmp.lt.s32.totalorder %s522_s16, %s522_s16 }
  0xff   :  { %p529_p5 = por %p528_p4, %p527_p3 }
 0x101   :  { %p530_p6 = pnand %p529_p5, %p523_p2 }
 0x12e   :  { %v33_v18 = vpop.xlane.xlu0 %32 }
 0x12f   :  { %476 = vlog2.f32 %v33_v18 }
 0x139   :  { %v477_v47 = vpop.eup %476 }
 0x13a   :  { %v35_v51 = vmul.f32 0.6931472, %v477_v47 }
 0x13c   :  { %v36_v30 = vsub.f32 %v704_v17, %v35_v51 }
 0x13e   :  { %37 = vst.msk [vmem:[#allocation2] sm:$0x3] %vm24_vm0, %v36_v30 }
 0x13f   :  { %533 = shalt.err (!%p530_p6)
}
 0x140   :  { %s534_s18 = scalar_lea.hbm %s968_s4, 32 }
 0x141   :  { %p535_p7 = scmp.ne.s32.totalorder %s968_s4, %s534_s18  ;;  %p538_p8 = scmp.lt.u32.totalorder %s534_s18, %s968_s4 }
 0x143   :  { %p540_p9 = pnand %p538_p8, %p535_p7 }
 0x145   :  { %543 = shalt.err (!%p540_p9)
}
 0x146   :  { %371 = dma.vmem_to_hbm [thread:$0]  %s369_s15, 32, %s968_s4, [#allocation3]  }
 0x147   :  { %544 = dma.done.wait [#allocation3], 32  }
 0x148   :  { %545 = vsyncadd [#allocation3], 4294967264 }
 0x149   :  { %546 = dma.done.wait [#allocation5], 384  }
 0x14a   :  { %547 = vsyncadd [#allocation5], 4294966912 }
 0x14b   :  { %407 = vsyncpa [#allocation3], 1 }
 0x14c   :  { %408 = vsyncpa [#allocation5], 1 }

</bundles_post_ra>
